<compile_context>
chip_gen: v7x
topology: tpu7x:2x2x1
jax: 0.10.0
libtpu: 0.0.40
codegen_flags: <defaults>
</compile_context>

<pallas_src>
import functools

import jax
import jax.numpy as jnp
from jax.experimental import pallas as pl
from jax.experimental.pallas import tpu as pltpu

BN_EPS = 1e-5      # torch.nn.BatchNorm2d default eps
LANE = 128         # TPU lane width


def _round_up(x, m):
    return ((x + m - 1) // m) * m


def _conv_relu_stats_kernel(p_ref, w_ref, prm_ref, y_ref, stat_ref, *,
                            m_valid, block_m, needs_mask):
    """One M-tile: im2col conv matmul + bias + ReLU + per-tile BN partial stats.

    p_ref:    (block_m, K_pad)  im2col patches (matmul dtype)
    w_ref:    (C_pad, K_pad)    conv weight (matmul dtype); last dims contracted
    prm_ref:  (8, C_pad)        f32; row 0 = conv bias
    y_ref:    (block_m, C_pad)  f32 activations (post bias+ReLU; padded rows zeroed)
    stat_ref: (1, 2, C_pad)     f32; row 0 = per-channel sum over valid rows,
                                row 1 = sum of squared deviations from the tile mean
    """
    m = pl.program_id(0)

    # K is un-tiled (single full-depth block): one MXU matmul, no accumulator
    # scratch, no pl.when init/finalize gates.
    acc = jax.lax.dot_general(
        p_ref[...], w_ref[...],
        dimension_numbers=(((1,), (1,)), ((), ())),
        preferred_element_type=jnp.float32)

    y = jnp.maximum(acc + prm_ref[0:1, :], 0.0)          # bias + ReLU (f32)

    if needs_mask:
        rows = m * block_m + jax.lax.broadcasted_iota(jnp.int32, (block_m, 1), 0)
        valid = rows < m_valid
        y = jnp.where(valid, y, 0.0)
        cnt = jnp.minimum(m_valid - m * block_m, block_m).astype(jnp.float32)
    else:
        valid = None
        cnt = jnp.float32(block_m)

    y_ref[...] = y

    # Per-tile two-pass stats (mean pivot) -> numerically safe variance combine.
    s = jnp.sum(y, axis=0, keepdims=True)                # (1, C_pad)
    tmean = s / cnt
    dev = y - tmean
    if needs_mask:
        dev = jnp.where(valid, dev, 0.0)
    m2 = jnp.sum(dev * dev, axis=0, keepdims=True)       # (1, C_pad)
    stat_ref[...] = jnp.concatenate([s, m2], axis=0)[None]


def _bn_maxpool_kernel(y_ref, prm_ref, o_ref, *, pkh, pkw, psh, psw, hp, wp):
    """Fused BatchNorm apply (y*scale+shift) + MaxPool2d for one batch image.

    y_ref:   (1, Ho, Wo, C_pad)  f32 conv+bias+ReLU activations
    prm_ref: (8, C_pad)          f32; row 0 = gamma*rstd, row 1 = beta - mean*gamma*rstd
    o_ref:   (1, Hp, Wp, C_pad)  f32 normalized, pooled output
    """
    scale = prm_ref[0:1, :]
    shift = prm_ref[1:2, :]
    best = None
    for a in range(pkh):
        for b in range(pkw):
            # Strided window tap (a, b): rows a, a+psh, ... ; cols b, b+psw, ...
            tap = y_ref[:, pl.ds(a, hp, psh), pl.ds(b, wp, psw), :]
            z = tap * scale + shift        # BN before max (gamma may be negative)
            best = z if best is None else jnp.maximum(best, z)
    o_ref[...] = best


def _im2col(x, kh, kw, sh, sw):
    """x: (N, C, H, W) -> (N*Ho*Wo, C*kh*kw); column order matches torch
    Conv2d weight .reshape(C_out, -1) (c_in major, then di, dj)."""
    # TODO(synk): for large C_in, replace wrapper-side im2col with an in-kernel
    #             kh*kw tap loop to avoid materializing the input 9x in HBM.
    N, C, H, W = x.shape
    Ho = (H - kh) // sh + 1
    Wo = (W - kw) // sw + 1
    cols = []
    for di in range(kh):
        for dj in range(kw):
            cols.append(jax.lax.slice(
                x, (0, 0, di, dj),
                (N, C, di + sh * (Ho - 1) + 1, dj + sw * (Wo - 1) + 1),
                (1, 1, sh, sw)))                       # (N, C, Ho, Wo)
    p = jnp.stack(cols, axis=0)                        # (kh*kw, N, C, Ho, Wo)
    p = jnp.transpose(p, (1, 3, 4, 2, 0))              # (N, Ho, Wo, C, kh*kw)
    return p.reshape(N * Ho * Wo, C * kh * kw), Ho, Wo


def encoder_forward(x_nchw, conv_w, conv_b, bn_gamma, bn_beta,
                    conv_stride=(1, 1), pool_kernel=(2, 2), pool_stride=(2, 2),
                    matmul_dtype=jnp.bfloat16, block_m=512):
    """Encoder forward: conv2d -> ReLU -> BatchNorm2d(batch stats) -> MaxPool2d -> dropout(eval).

    x_nchw: (N, C_in, H, W); conv_w: (C_out, C_in, kh, kw) torch layout; conv_b: (C_out,).
    matmul_dtype=bf16 feeds the MXU natively on v5e/v6e/v7x (f32 accumulate);
    block_m ~512 for v7x, 1024-2048 fits v5e/v6e's larger VMEM.
    """
    N, C_in, H, W = x_nchw.shape
    C_out = conv_w.shape[0]
    kh, kw = int(conv_w.shape[2]), int(conv_w.shape[3])
    sh, sw = conv_stride
    pkh, pkw = pool_kernel
    psh, psw = pool_stride

    K = C_in * kh * kw
    K_pad = _round_up(K, LANE)       # lane-align the contraction dim
    C_pad = _round_up(C_out, LANE)   # lane-dense channels (padding sliced off at the end)

    # ---- im2col (layout plumbing in XLA; the matmul runs in the kernel) -------
    patches, Ho, Wo = _im2col(x_nchw.astype(jnp.float32), kh, kw, sh, sw)
    M = N * Ho * Wo
    Hp = (Ho - pkh) // psh + 1
    Wp = (Wo - pkw) // psw + 1

    mt = _round_up(min(block_m, _round_up(M, 8)), 8)     # M-tile rows
    M_pad = _round_up(M, mt)
    n_m = M_pad // mt

    patches = jnp.pad(patches, ((0, M_pad - M), (0, K_pad - K))).astype(matmul_dtype)
    # Conv weight: reshape only (contiguous, free) + zero-pad; NO transpose —
    # the kernel contracts the last dims of both operands directly.
    w_mat = jnp.pad(conv_w.reshape(C_out, K).astype(jnp.float32),
                    ((0, C_pad - C_out), (0, K_pad - K))).astype(matmul_dtype)
    params1 = jnp.zeros((8, C_pad), jnp.float32).at[0, :C_out].set(
        conv_b.astype(jnp.float32))

    # ---- pass 1: conv matmul + bias + ReLU + per-tile BN partial stats --------
    # TODO(synk): for very large K (K_pad >> 512) add a K grid axis ("arbitrary")
    #             accumulating directly into y_ref instead of the un-tiled K block.
    kern1 = functools.partial(_conv_relu_stats_kernel, m_valid=M, block_m=mt,
                              needs_mask=(M_pad != M))
    y_flat, stats = pl.pallas_call(
        kern1,
        out_shape=(jax.ShapeDtypeStruct((M_pad, C_pad), jnp.float32),
                   jax.ShapeDtypeStruct((n_m, 2, C_pad), jnp.float32)),
        grid_spec=pltpu.PrefetchScalarGridSpec(
            num_scalar_prefetch=0,
            grid=(n_m,),
            in_specs=[
                pl.BlockSpec((mt, K_pad), lambda m: (m, 0)),
                pl.BlockSpec((C_pad, K_pad), lambda m: (0, 0)),
                pl.BlockSpec((8, C_pad), lambda m: (0, 0)),
            ],
            out_specs=[
                pl.BlockSpec((mt, C_pad), lambda m: (m, 0)),
                pl.BlockSpec((1, 2, C_pad), lambda m: (m, 0, 0)),
            ],
        ),
        compiler_params=pltpu.CompilerParams(dimension_semantics=("parallel",)),
    )(patches, w_mat, params1)

    # ---- combine per-tile stats (Chan parallel variance) -> BN scale / shift ---
    counts = jnp.asarray([min(mt, M - t * mt) for t in range(n_m)], jnp.float32)
    sum_t = stats[:, 0, :]                               # (n_m, C_pad)
    m2_t = stats[:, 1, :]
    mean = jnp.sum(sum_t, axis=0) / M                    # (C_pad,)
    mean_t = sum_t / counts[:, None]
    var = (jnp.sum(m2_t, axis=0)
           + jnp.sum(counts[:, None] * (mean_t - mean[None, :]) ** 2, axis=0)) / M
    rstd = jax.lax.rsqrt(var + BN_EPS)
    gamma_pad = jnp.zeros((C_pad,), jnp.float32).at[:C_out].set(bn_gamma.astype(jnp.float32))
    beta_pad = jnp.zeros((C_pad,), jnp.float32).at[:C_out].set(bn_beta.astype(jnp.float32))
    scale = gamma_pad * rstd
    shift = beta_pad - mean * scale
    params2 = jnp.zeros((8, C_pad), jnp.float32).at[0].set(scale).at[1].set(shift)

    # Restore spatial structure for pass 2 (free reshape when M_pad == M).
    y4 = (y_flat if M_pad == M else y_flat[:M]).reshape(N, Ho, Wo, C_pad)

    # ---- pass 2: fused BatchNorm apply + MaxPool2d ------------------------------
    # TODO(synk): for very tall conv outputs, additionally tile the pooled-row axis.
    kern2 = functools.partial(_bn_maxpool_kernel, pkh=pkh, pkw=pkw, psh=psh,
                              psw=psw, hp=Hp, wp=Wp)
    pooled = pl.pallas_call(
        kern2,
        out_shape=jax.ShapeDtypeStruct((N, Hp, Wp, C_pad), jnp.float32),
        grid_spec=pltpu.PrefetchScalarGridSpec(
            num_scalar_prefetch=0,
            grid=(N,),
            in_specs=[
                pl.BlockSpec((1, Ho, Wo, C_pad), lambda n: (n, 0, 0, 0)),
                pl.BlockSpec((8, C_pad), lambda n: (0, 0)),
            ],
            out_specs=pl.BlockSpec((1, Hp, Wp, C_pad), lambda n: (n, 0, 0, 0)),
        ),
        compiler_params=pltpu.CompilerParams(dimension_semantics=("parallel",)),
    )(y4, params2)

    # Dropout: identity in eval mode.
    # TODO(synk): training-mode dropout (random mask + 1/(1-p) scaling) not implemented.
    # TODO(synk): BatchNorm2d running_mean/running_var neither consumed nor updated
    #             (normalization uses training-mode batch statistics).
    # Slice off channel lane padding and return NCHW like torch.
    return jnp.transpose(pooled[:, :, :, :C_out], (0, 3, 1, 2))


if __name__ == "__main__":
    # Encoder config (values_dict): channels_out=32, kernel=(3,3), stride=(1,1),
    # maxpool={'kernel': (2,2), 'stride': (2,2)}, act_fn='relu',
    # batch_normalization=True, dropout=0.25 (eval -> identity).
    N, C_IN, H, W = 2, 4, 16, 16
    C_OUT, KH, KW = 32, 3, 3
    SH, SW = 1, 1
    PKH, PKW, PSH, PSW = 2, 2, 2, 2

    key = jax.random.PRNGKey(0)
    kx, kw_, kb, kg, kbe = jax.random.split(key, 5)

    x = jax.random.normal(kx, (N, C_IN, H, W), dtype=jnp.float32)
    fan_in = C_IN * KH * KW
    bound = 1.0 / (fan_in ** 0.5)
    conv_w = jax.random.uniform(kw_, (C_OUT, C_IN, KH, KW),
                                minval=-bound, maxval=bound, dtype=jnp.float32)
    conv_b = jax.random.uniform(kb, (C_OUT,), minval=-bound, maxval=bound,
                                dtype=jnp.float32)
    gamma = 1.0 + 0.1 * jax.random.normal(kg, (C_OUT,), dtype=jnp.float32)
    beta = 0.1 * jax.random.normal(kbe, (C_OUT,), dtype=jnp.float32)

    # block_m=128 keeps the demo tiny while exercising the multi-M-tile stats
    # combine and padded-row masking (M = 2*14*14 = 392 -> 4 tiles, last has 8 rows).
    out = encoder_forward(x, conv_w, conv_b, gamma, beta,
                          conv_stride=(SH, SW),
                          pool_kernel=(PKH, PKW), pool_stride=(PSH, PSW),
                          block_m=128)
    out = jax.block_until_ready(out)

    # Pure-JAX reference. The kernel feeds the MXU bf16 inputs (f32 accumulate), so
    # the reference quantizes x / W to bf16 the same way; bias, ReLU, BN batch
    # statistics and maxpool are all f32 on both sides.
    xq = x.astype(jnp.bfloat16).astype(jnp.float32)
    wq = conv_w.astype(jnp.bfloat16).astype(jnp.float32)
    ref = jax.lax.conv_general_dilated(
        xq, wq, window_strides=(SH, SW), padding="VALID",
        dimension_numbers=("NCHW", "OIHW", "NCHW"),
        precision=jax.lax.Precision.HIGHEST)
    ref = ref + conv_b[None, :, None, None]
    ref = jnp.maximum(ref, 0.0)
    m = ref.mean(axis=(0, 2, 3), keepdims=True)
    v = ((ref - m) ** 2).mean(axis=(0, 2, 3), keepdims=True)
    ref = (ref - m) / jnp.sqrt(v + BN_EPS)
    ref = ref * gamma[None, :, None, None] + beta[None, :, None, None]
    ref = jax.lax.reduce_window(
        ref, -jnp.inf, jax.lax.max,
        window_dimensions=(1, 1, PKH, PKW),
        window_strides=(1, 1, PSH, PSW), padding="VALID")

    assert out.shape == ref.shape, (out.shape, ref.shape)
    err = jnp.max(jnp.abs(out - ref))
    assert jnp.allclose(out, ref, atol=2e-3, rtol=2e-3), f"mismatch vs reference: {err}"

    print("KERNEL_OK")
</pallas_src>

<mosaic_0001>
module attributes {stable_mosaic.version = 11 : i64} {
  func.func @_conv_relu_stats_kernel(%arg0: i32, %arg1: memref<128x128xbf16, #tpu.memory_space<vmem>>, %arg2: memref<128x128xbf16, #tpu.memory_space<vmem>>, %arg3: memref<8x128xf32, #tpu.memory_space<vmem>>, %arg4: memref<128x128xf32, #tpu.memory_space<vmem>>, %arg5: memref<1x2x128xf32, #tpu.memory_space<vmem>>) attributes {dimension_semantics = [#tpu.dimension_semantics<parallel>], iteration_bounds = array<i64: 4>, scalar_prefetch = 0 : i64, scratch_operands = 0 : i64, tpu.core_type = #tpu.core_type<tc>, window_params = [{transform_indices = @transform_0, window_bounds = array<i64: 128, 128>}, {pipeline_mode = #tpu.pipeline_mode<synchronous>, transform_indices = @transform_1, window_bounds = array<i64: 128, 128>}, {pipeline_mode = #tpu.pipeline_mode<synchronous>, transform_indices = @transform_2, window_bounds = array<i64: 8, 128>}, {transform_indices = @transform_3, window_bounds = array<i64: 128, 128>}, {transform_indices = @transform_4, window_bounds = array<i64: 1, 2, 128>}]} {
    %c0 = arith.constant 0 : index
    %c0_0 = arith.constant 0 : index
    %0 = vector.load %arg1[%c0, %c0_0] : memref<128x128xbf16, #tpu.memory_space<vmem>>, vector<128x128xbf16>
    %c0_1 = arith.constant 0 : index
    %c0_2 = arith.constant 0 : index
    %1 = vector.load %arg2[%c0_1, %c0_2] : memref<128x128xbf16, #tpu.memory_space<vmem>>, vector<128x128xbf16>
    %cst = arith.constant dense<0.000000e+00> : vector<128x128xf32>
    %2 = tpu.matmul %0, %1, %cst {dimension_numbers = #tpu.dot_dimension_numbers<[1], [1], [0], [0], [0, 0, 1, 0], [], []>} : vector<128x128xbf16>, vector<128x128xbf16>, vector<128x128xf32> -> vector<128x128xf32>
    %c0_3 = arith.constant 0 : index
    %c0_4 = arith.constant 0 : index
    %3 = vector.load %arg3[%c0_3, %c0_4] : memref<8x128xf32, #tpu.memory_space<vmem>>, vector<1x128xf32>
    %4 = vector.broadcast %3 : vector<1x128xf32> to vector<128x128xf32>
    %5 = arith.addf %2, %4 : vector<128x128xf32>
    %cst_5 = arith.constant 0.000000e+00 : f32
    %6 = vector.broadcast %cst_5 : f32 to vector<128x128xf32>
    %7 = arith.maximumf %5, %6 : vector<128x128xf32>
    %c128_i32 = arith.constant 128 : i32
    %8 = arith.muli %arg0, %c128_i32 : i32
    %9 = tpu.iota {dimensions = array<i32: 0>} : vector<128x1xi32>
    %10 = vector.broadcast %8 : i32 to vector<128x1xi32>
    %11 = arith.addi %10, %9 : vector<128x1xi32>
    %c392_i32 = arith.constant 392 : i32
    %12 = vector.broadcast %c392_i32 : i32 to vector<128x1xi32>
    %13 = arith.cmpi slt, %11, %12 : vector<128x1xi32>
    %cst_6 = arith.constant 0.000000e+00 : f32
    %14 = vector.shape_cast %13 : vector<128x1xi1> to vector<128x1xi1>
    %15 = vector.broadcast %14 : vector<128x1xi1> to vector<128x128xi1>
    %16 = vector.broadcast %cst_6 : f32 to vector<128x128xf32>
    %17 = arith.select %15, %7, %16 : vector<128x128xi1>, vector<128x128xf32>
    %c128_i32_7 = arith.constant 128 : i32
    %18 = arith.muli %arg0, %c128_i32_7 : i32
    %c392_i32_8 = arith.constant 392 : i32
    %19 = arith.subi %c392_i32_8, %18 : i32
    %c128_i32_9 = arith.constant 128 : i32
    %20 = arith.minsi %19, %c128_i32_9 : i32
    %21 = arith.sitofp %20 : i32 to f32
    %c0_10 = arith.constant 0 : index
    %c0_11 = arith.constant 0 : index
    %22 = vector.load %arg4[%c0_10, %c0_11] : memref<128x128xf32, #tpu.memory_space<vmem>>, vector<128x128xf32>
    tpu.vector_store %arg4[%c0_10, %c0_11], %17 {strides = array<i32>} : memref<128x128xf32, #tpu.memory_space<vmem>>, vector<128x128xf32>,
    %cst_12 = arith.constant dense<0.000000e+00> : vector<128xf32>
    %23 = vector.multi_reduction <add>, %17, %cst_12 [0] : vector<128x128xf32> to vector<128xf32>
    %24 = vector.shape_cast %23 : vector<128xf32> to vector<1x128xf32>
    %25 = vector.broadcast %21 : f32 to vector<1x128xf32>
    %26 = arith.divf %24, %25 : vector<1x128xf32>
    %27 = vector.broadcast %26 : vector<1x128xf32> to vector<128x128xf32>
    %28 = arith.subf %17, %27 : vector<128x128xf32>
    %cst_13 = arith.constant 0.000000e+00 : f32
    %29 = vector.shape_cast %13 : vector<128x1xi1> to vector<128x1xi1>
    %30 = vector.broadcast %29 : vector<128x1xi1> to vector<128x128xi1>
    %31 = vector.broadcast %cst_13 : f32 to vector<128x128xf32>
    %32 = arith.select %30, %28, %31 : vector<128x128xi1>, vector<128x128xf32>
    %33 = arith.mulf %32, %32 : vector<128x128xf32>
    %cst_14 = arith.constant dense<0.000000e+00> : vector<128xf32>
    %34 = vector.multi_reduction <add>, %33, %cst_14 [0] : vector<128x128xf32> to vector<128xf32>
    %35 = vector.shape_cast %34 : vector<128xf32> to vector<1x128xf32>
    %36 = tpu.concatenate %24, %35 in 0 : vector<1x128xf32>, vector<1x128xf32> -> vector<2x128xf32>
    %37 = vector.shape_cast %36 : vector<2x128xf32> to vector<1x2x128xf32>
    %c0_15 = arith.constant 0 : index
    %c0_16 = arith.constant 0 : index
    %c0_17 = arith.constant 0 : index
    %38 = vector.load %arg5[%c0_15, %c0_16, %c0_17] : memref<1x2x128xf32, #tpu.memory_space<vmem>>, vector<1x2x128xf32>
    tpu.vector_store %arg5[%c0_15, %c0_16, %c0_17], %37 {strides = array<i32>} : memref<1x2x128xf32, #tpu.memory_space<vmem>>, vector<1x2x128xf32>,
    return
  }
  func.func @transform_0(%arg0: i32) -> (i32, i32) {
    %c0_i32 = arith.constant 0 : i32
    %c0_i32_0 = arith.constant 0 : i32
    return %arg0, %c0_i32 : i32, i32
  }
  func.func @transform_1(%arg0: i32) -> (i32, i32) {
    %c0_i32 = arith.constant 0 : i32
    %c0_i32_0 = arith.constant 0 : i32
    %c0_i32_1 = arith.constant 0 : i32
    return %c0_i32, %c0_i32_0 : i32, i32
  }
  func.func @transform_2(%arg0: i32) -> (i32, i32) {
    %c0_i32 = arith.constant 0 : i32
    %c0_i32_0 = arith.constant 0 : i32
    %c0_i32_1 = arith.constant 0 : i32
    return %c0_i32, %c0_i32_0 : i32, i32
  }
  func.func @transform_3(%arg0: i32) -> (i32, i32) {
    %c0_i32 = arith.constant 0 : i32
    %c0_i32_0 = arith.constant 0 : i32
    return %arg0, %c0_i32 : i32, i32
  }
  func.func @transform_4(%arg0: i32) -> (i32, i32, i32) {
    %c0_i32 = arith.constant 0 : i32
    %c0_i32_0 = arith.constant 0 : i32
    %c0_i32_1 = arith.constant 0 : i32
    return %arg0, %c0_i32, %c0_i32_0 : i32, i32, i32
  }
}

</mosaic_0001>

<bundles_post_ra>
// kernel: tpu_custom_call.1
= control target key start
LH: loop header
LB: loop body
LE: loop exit
PB: predicated region body
PF: predicated region fallthrough
CT: control target
= control target key end

     0   :  { %10 = vsyncpa [#allocation3], 0  ;;  %s1832_s0 = inlined_call_operand.hbm [shape: bf16[512,128], index: 0, kind: input, shape index: {}]   ;;  %s1833_s1 = inlined_call_operand.hbm [shape: bf16[128,128], index: 1, kind: input, shape index: {}]   ;;  %s1834_s2 = inlined_call_operand.hbm [shape: f32[8,128], index: 2, kind: input, shape index: {}]   ;;  %s1835_s3 = inlined_call_operand.hbm [shape: f32[512,128], index: 3, kind: output, shape index: {0}]   ;;  %s1836_s4 = inlined_call_operand.hbm [shape: f32[4,2,128], index: 4, kind: output, shape index: {1}]  }
   0x1   :  { %12 = vsyncpa [#allocation3 + $0x1], 0 }
   0x2   :  { %13 = vsyncpa [#allocation6], 0 }
   0x3   :  { %14 = vsyncpa [#allocation4], 0 }
   0x4   :  { %16 = vsyncpa [#allocation4 + $0x1], 0 }
   0x5   :  { %17 = vsyncpa [#allocation10], 0 }
   0x6   :  { %19 = vsyncpa [#allocation10 + $0x1], 0  ;;  %s1297_s15 = smov 0   ;;  %s1299_s16 = smov 0  }
   0x7   :  { %s1301_s17 = smov 0   ;;  %s1303_s18 = smov 0  }
   0x8 LB: > { %s1318_s19 = sadd.s32 4294967295, %s1261_s18   ;;  %s874_s20 = sadd.s32 4294967294, %s1261_s18   ;;  %s1261_s18 = sphi %s1303_s18, %s1855_s18   ;;  %s1257_s17 = sphi %s1301_s17, %s1854_s17   ;;  %s1253_s16 = sphi %s1299_s16, %s1853_s16   ;;  %s1249_s15 = sphi %s1297_s15, %s1852_s15  }
   0x9   : > { %p45_p0 = scmp.ne.s32.totalorder %s1253_s16, %s1249_s15  ;;  %p1837_p1 = scmp.eq.s32.totalorder %s1318_s19, 0 }
   0xa   : > { %p117_p3 = scmp.eq.s32.totalorder %s874_s20, 3  ;;  %p875_p5 = scmp.ge.s32.totalorder %s1261_s18, 1 }
   0xb   : > { %p1327_p4 = por %p1837_p1, %p45_p0  ;;  %p150_p7 = scmp.lt.s32.totalorder %s1261_s18, 5 }
   0xc   : > { %p1332_p6 = por %p117_p3, %p45_p0  ;;  %s1263_s24 = smov [#allocation5]  }
   0xd   : > { %s1840_s21 = scalar_select %p1327_p4, 1, 0 }
   0xe   : > { %s1841_s22 = scalar_select %p1332_p6, 1, 0 }
   0xf   : > { %p1337_p8 = pnand %p875_p5, %p150_p7  ;;  %s162_s25 = sshll.u32 %s1263_s24, 4  ;;  %s163_s25 = int_to_ptr.vmem [resolvable:$true] %s162_s25 }
  0x10   : > { %s1264_s27 = smov [#allocation7]   ;;  %s1073_s5 = scalar_lea.hbm %s1833_s1, 1024 }
  0x11   : > { %s1842_s23 = scalar_select %p1337_p8, 1, 0 }
  0x12   : > { %p993_p9 = pneg %p1337_p8  ;;  %s176_s28 = sshll.u32 %s1264_s27, 4  ;;  %s1349_s28 = int_to_ptr.vmem [resolvable:$true] %s176_s28 }
  0x13   : > { %p1074_p11 = scmp.ne.s32.totalorder %s1833_s1, %s1073_s5  ;;  %p1080_p3 = scmp.lt.u32.totalorder %s1073_s5, %s1833_s1 }
  0x14   : > { %p1345_p10 = pnand %p993_p9, %p1837_p1 }
  0x16   : > { %p1075_p12 = pneg %p1345_p10 }
  0x18   : > { %p1076_p13 = pnand %p1075_p12, %p1074_p11 }
  0x1a   : > { %p1077_p0 = pneg %p1076_p13 }
  0x1c   : > { %p1082_p5 = pnand %p1080_p3, %p1077_p0 }
  0x1e   : > { %1085 = shalt.err (!%p1082_p5)
}
  0x1f   : > { %s1086_s10 = scalar_lea.vmem %s163_s25, 1024  ;;  %p1094_p2 = scmp.lt.s32.totalorder %s163_s25, %s163_s25 }
  0x20   : > { %p1087_p7 = scmp.ne.s32.totalorder %s163_s25, %s1086_s10  ;;  %p1095_p6 = scmp.lt.s32.totalorder %s1086_s10, %s1086_s10 }
  0x22   : > { %p1089_p9 = pnand %p1087_p7, %p1075_p12  ;;  %p1096_p4 = por %p1095_p6, %p1094_p2 }
  0x24   : > { %p1090_p1 = pneg %p1089_p9 }
  0x26   : > { %p1097_p8 = pnand %p1096_p4, %p1090_p1 }
  0x28   : > { %1100 = shalt.err (!%p1097_p8)
}
  0x29   : > { %s1265_s11 = smov 64   ;;  %s1266_s12 = smov 4  }
  0x2a   : > { %996 = dma.hbm_to_vmem [thread:$0]  (!%p1345_p10), %s1833_s1, 1024, %s163_s25, [#allocation6], %s1265_s11, %s1265_s11, %s1266_s12  }
  0x2b   : > { %s1101_s27 = scalar_lea.hbm %s1834_s2, 128 }
  0x2c   : > { %p1102_p1 = scmp.ne.s32.totalorder %s1834_s2, %s1101_s27  ;;  %p1108_p6 = scmp.lt.u32.totalorder %s1101_s27, %s1834_s2 }
  0x2e   : > { %p1104_p2 = pnand %p1102_p1, %p1075_p12 }
  0x30   : > { %p1105_p4 = pneg %p1104_p2 }
  0x32   : > { %p1110_p8 = pnand %p1108_p6, %p1105_p4 }
  0x34   : > { %1113 = shalt.err (!%p1110_p8)
}
  0x35   : > { %s1114_s25 = scalar_lea.vmem %s1349_s28, 128  ;;  %p1122_p3 = scmp.lt.s32.totalorder %s1349_s28, %s1349_s28 }
  0x36   : > { %p1115_p11 = scmp.ne.s32.totalorder %s1349_s28, %s1114_s25  ;;  %p1123_p5 = scmp.lt.s32.totalorder %s1114_s25, %s1114_s25 }
  0x38   : > { %p1117_p13 = pnand %p1115_p11, %p1075_p12  ;;  %p1124_p7 = por %p1123_p5, %p1122_p3 }
  0x3a   : > { %p1118_p0 = pneg %p1117_p13 }
  0x3c   : > { %p1125_p9 = pnand %p1124_p7, %p1118_p0 }
  0x3e   : > { %1128 = shalt.err (!%p1125_p9)
}
  0x3f   : > { %999 = dma.hbm_to_vmem [thread:$0]  (!%p1345_p10), %s1834_s2, 128, %s1349_s28, [#allocation6]  }
  0x40   : > { %s1402_s9 = sadd.s32 1, %s1261_s18   ;;  %s32_s26 = sadd.s32 1, %s1257_s17 }
  0x41   : > { %s29_s10 = ssub.s32 %s1261_s18, %s1402_s9  ;;  %p39_p12 = scmp.ne.s32.totalorder %s1257_s17, %s1253_s16 }
  0x42   : > { %p30_p1 = scmp.eq.s32.totalorder %s29_s10, 0  ;;  %p40_p2 = scmp.eq.s32.totalorder %s1261_s18, 0 }
  0x43   : > { %p1844_p4 = scmp.eq.s32.totalorder %s1318_s19, 3  ;;  %p1013_p8 = scmp.lt.s32.totalorder %s1261_s18, 4 }
  0x44   : > { %s1418_s14 = scalar_select %p30_p1, %s1257_s17, %s32_s26  }
  0x45   : > { %p1412_p6 = por %p1844_p4, %p39_p12  ;;  %p41_p11 = por %p40_p2, %p39_p12 }
  0x46   : > { %s187_s20 = sand.u32 1, %s1257_s17   ;;  %s913_s28 = sshll.u32 %s1261_s18, 10 }
  0x47   : > { %s879_s24 = sshll.u32 %s187_s20, 6  ;;  %s1425_s30 = scalar_lea.hbm %s1832_s0, %s913_s28 }
  0x48   : > { %s191_s5 = scalar_lea.vmem [#allocation2], %s879_s24  ;;  %p1429_p10 = pnand %p1013_p8, %p41_p11 }
  0x49   : > { %s198_s6 = sshll.u32 %s191_s5, 4  ;;  %s1433_s7 = scalar_lea.sflag [#allocation3], %s187_s20  ;;  %s1427_s6 = int_to_ptr.vmem [resolvable:$true] %s198_s6 }
  0x4a   : > { %s1129_s8 = scalar_lea.hbm %s1425_s30, 1024  ;;  %p1131_p0 = pneg %p1429_p10 }
  0x4b   : > { %p1130_p13 = scmp.ne.s32.totalorder %s1425_s30, %s1129_s8  ;;  %s1134_s24 = scalar_lea.hbm %s1832_s0, 4096 }
  0x4c   : > { %p1135_p7 = scmp.lt.u32.totalorder %s1425_s30, %s1832_s0  ;;  %p1136_p9 = scmp.lt.u32.totalorder %s1134_s24, %s1129_s8 }
  0x4d   : > { %p1132_p3 = pnand %p1131_p0, %p1130_p13  ;;  %p1138_p1 = scmp.lt.u32.totalorder %s1129_s8, %s1425_s30 }
  0x4e   : > { %p1137_p12 = por %p1136_p9, %p1135_p7 }
  0x4f   : > { %p1133_p5 = pneg %p1132_p3 }
  0x50   : > { %p1139_p2 = por %p1138_p1, %p1137_p12 }
  0x52   : > { %p1140_p4 = pnand %p1139_p2, %p1133_p5 }
  0x54   : > { %1143 = shalt.err (!%p1140_p4)
}
  0x55   : > { %s1144_s20 = scalar_lea.vmem %s1427_s6, 1024  ;;  %s1267_s29 = smov [#allocation2]  }
  0x56   : > { %p1145_p8 = scmp.ne.s32.totalorder %s1427_s6, %s1144_s20  ;;  %s1149_s5 = sshll.u32 %s1267_s29, 4  ;;  %s1150_s5 = int_to_ptr.vmem [resolvable:$false] %s1149_s5 }
  0x57   : > { %s1151_s26 = scalar_lea.vmem %s1150_s5, 2048  ;;  %p1152_p3 = scmp.lt.s32.totalorder %s1427_s6, %s1150_s5 }
  0x58   : > { %p1147_p11 = pnand %p1145_p8, %p1131_p0  ;;  %p1153_p7 = scmp.lt.s32.totalorder %s1151_s26, %s1144_s20 }
  0x5a   : > { %p1148_p13 = pneg %p1147_p11  ;;  %p1154_p9 = por %p1153_p7, %p1152_p3 }
  0x5c   : > { %p1155_p12 = pnand %p1154_p9, %p1148_p13 }
  0x5e   : > { %1158 = shalt.err (!%p1155_p12)
}
  0x5f   : > { %1003 = dma.hbm_to_vmem [thread:$0]  (!%p1429_p10), %s1425_s30, 1024, %s1427_s6, %s1433_s7, %s1265_s11, %s1265_s11, %s1266_s12  }
  0x60   : > { %p1847_p0 = scmp.ne.s32.totalorder %s1842_s23, 0 }
  0x61   : > { %s1467_s8 = sand.u32 (!%p1847_p0), 1, %s1253_s16   ;;  %p1848_p5 = scmp.ne.s32.totalorder (!%p1847_p0), %s1840_s21, 0 }
  0x62   : > { %210 = sbr.rel (%p1847_p0) target bundleno = 514 (0x202), region = 32  ;;  %s883_s10 = sshll.u32 (!%p1847_p0), %s1467_s8, 6 }
  0x63   : > { %s213_s24 = scalar_lea.sflag (!%p1847_p0), [#allocation3], %s1467_s8  ;;  %s1471_s28 = scalar_lea.vmem (!%p1847_p0), [#allocation2], %s883_s10 }
  0x69   : > { %1232 = dma.done.wait (%p1848_p5), %s213_s24, 1024  }
  0x6a   : > { %1234 = vsyncadd (%p1848_p5), %s213_s24, 4294966272  ;;  %p1849_p10 = scmp.eq.s32.totalorder %s1318_s19, 0 }
  0x6c   : > { %1236 = dma.done.wait (%p1849_p10), [#allocation6], 1152   ;;  %p1850_p1 = pmov %p1849_p10 }
  0x6d   : > { %v1055_v0 = vld [vmem:[#allocation5] sm:$0xff]   ;;  %v1056_v1 = vld [vmem:[#allocation5 + $0x8] sm:$0xff]   ;;  %v1057_v2 = vld [vmem:[#allocation5 + $0x10] sm:$0xff]   ;;  %v504_v16 = vlaneseq  ;;  %s905_s21 = sshll.u32 %s1318_s19, 7  ;;  %s886_s23 = sshll.u32 %s1467_s8, 7 }
  0x6e   : > { %1238 = vsyncadd (%p1850_p1), [#allocation6], 4294966144  ;;  %931 = vmatprep.subr.bf16.mxu0 %v1055_v0  ;;  %963 = vmatprep.subr.bf16.mxu1 %v1055_v0  ;;  %v1063_v3 = vld [vmem:[%s1471_s28] sm:$0xff]   ;;  %v1058_v5 = vld [vmem:[#allocation5 + $0x18] sm:$0xff]   ;;  %v1492_v19 = vstv %s905_s21  ;;  %s1569_s11 = scalar_lea.vmem [#allocation8], %s886_s23  ;;  %s914_s12 = sshll.u32 %s1318_s19, 11 }
  0x6f   : > { %932 = vmatpush3.bf16.xpose.msra.mxu0 %v1055_v0  ;;  %971 = vmatpush3.bf16.xpose.msra.mxu1 %v1055_v0  ;;  %v1067_v4 = vld [vmem:[%s1471_s28 + $0x20] sm:$0xff]   ;;  %v1060_v7 = vld [vmem:[#allocation5 + $0x28] sm:$0xff]   ;;  %v1061_v8 = vld [vmem:[#allocation5 + $0x30] sm:$0xff]   ;;  %v505_v17 = vshrl.u32 %v504_v16, 7  ;;  %s737_s30 = sshll.u32 %s1569_s11, 4  ;;  %s1682_s7 = scalar_lea.hbm %s1835_s3, %s914_s12  ;;  %s1684_s30 = int_to_ptr.vmem [resolvable:$true] %s737_s30 }
  0x70   : > { %933 = vmatprep.subr.bf16.mxu0 %v1056_v1  ;;  %964 = vmatprep.subr.bf16.mxu1 %v1056_v1  ;;  %v1059_v6 = vld [vmem:[#allocation5 + $0x20] sm:$0xff]   ;;  %v1062_v9 = vld [vmem:[#allocation5 + $0x38] sm:$0xff]   ;;  %v1064_v10 = vld [vmem:[%s1471_s28 + $0x8] sm:$0xff]   ;;  %s1693_s27 = ssub.s32 392, %s905_s21  ;;  %s719_s20 = scalar_lea.sflag [#allocation4], %s1467_s8 }
  0x71   : > { %947 = vmatprep.mubr.bf16.mxu0 %v1063_v3  ;;  %955 = vmatprep.mubr.bf16.mxu1 %v1067_v4  ;;  %v1068_v11 = vld [vmem:[%s1471_s28 + $0x28] sm:$0xff]   ;;  %v1065_v12 = vld [vmem:[%s1471_s28 + $0x10] sm:$0xff]   ;;  %v1066_v14 = vld [vmem:[%s1471_s28 + $0x18] sm:$0xff]   ;;  %v507_v18 = vadd.s32 16, %v505_v17  ;;  %v508_v20 = vadd.s32 24, %v505_v17  ;;  %v506_v21 = vadd.s32 8, %v505_v17  ;;  %v1498_v27 = vadd.s32 %v1492_v19, %v505_v17 }
  0x72   : > { %v1069_v13 = vld [vmem:[%s1471_s28 + $0x30] sm:$0xff]   ;;  %v1070_v15 = vld [vmem:[%s1471_s28 + $0x38] sm:$0xff]   ;;  %v515_v22 = vadd.s32 80, %v505_v17  ;;  %v513_v23 = vadd.s32 64, %v505_v17  ;;  %v516_v24 = vadd.s32 88, %v505_v17  ;;  %v514_v25 = vadd.s32 72, %v505_v17 }
  0x73   : > { %v1495_v26 = vadd.s32 %v1492_v19, %v507_v18  ;;  %v1501_v28 = vadd.s32 %v1492_v19, %v508_v20  ;;  %v511_v29 = vadd.s32 48, %v505_v17  ;;  %v1504_v30 = vadd.s32 %v1492_v19, %v506_v21  ;;  %v1520_v39 = vld [vmem:[#allocation7] ss:$0 sm:$0xff]  ;;  %s1159_s29 = scalar_lea.vmem %s1684_s30, 2048  ;;  %s1268_s5 = smov [#allocation8]  }
  0x74   : > { %v509_v31 = vadd.s32 32, %v505_v17  ;;  %v512_v32 = vadd.s32 56, %v505_v17  ;;  %v510_v33 = vadd.s32 40, %v505_v17  ;;  %v1507_v34 = vadd.s32 %v1492_v19, %v515_v22  ;;  %p1160_p2 = scmp.ne.s32.totalorder %s1684_s30, %s1159_s29  ;;  %s1163_s26 = sshll.u32 %s1268_s5, 4  ;;  %s1164_s26 = int_to_ptr.vmem [resolvable:$false] %s1163_s26 }
  0x75   : > { %v1510_v35 = vadd.s32 %v1492_v19, %v513_v23  ;;  %v1513_v36 = vadd.s32 %v1492_v19, %v516_v24  ;;  %v1516_v37 = vadd.s32 %v1492_v19, %v514_v25  ;;  %vm540_vm0 = vcmp.lt.s32.totalorder %v1495_v26, 392  ;;  %s1165_s10 = scalar_lea.vmem %s1164_s26, 4096  ;;  %p1166_p11 = scmp.lt.s32.totalorder %s1684_s30, %s1164_s26 }
  0x76   : > { %vm538_vm1 = vcmp.lt.s32.totalorder %v1498_v27, 392  ;;  %v519_v38 = vadd.s32 112, %v505_v17  ;;  %vm541_vm2 = vcmp.lt.s32.totalorder %v1501_v28, 392  ;;  %v1524_v40 = vadd.s32 %v1492_v19, %v511_v29  ;;  %p1161_p4 = pnand %p1160_p2, %p1412_p6  ;;  %p1167_p13 = scmp.lt.s32.totalorder %s1165_s10, %s1159_s29 }
  0x77   : > { %934 = vmatpush3.bf16.xpose.msra.mxu0 %v1056_v1  ;;  %972 = vmatpush3.bf16.xpose.msra.mxu1 %v1056_v1  ;;  %v517_v41 = vadd.s32 96, %v505_v17  ;;  %v520_v42 = vadd.s32 120, %v505_v17  ;;  %vm539_vm3 = vcmp.lt.s32.totalorder %v1504_v30, 392  ;;  %v1529_v43 = vadd.s32 %v1492_v19, %v509_v31 }
  0x78   : > { %935 = vmatprep.subr.bf16.mxu0 %v1057_v2  ;;  %965 = vmatprep.subr.bf16.mxu1 %v1057_v2  ;;  %v1532_v44 = vadd.s32 %v1492_v19, %v512_v32  ;;  %v1535_v45 = vadd.s32 %v1492_v19, %v510_v33  ;;  %vm548_vm4 = vcmp.lt.s32.totalorder %v1507_v34, 392  ;;  %vm546_vm5 = vcmp.lt.s32.totalorder %v1510_v35, 392  ;;  %p1162_p8 = pneg %p1161_p4  ;;  %p1168_p3 = por %p1167_p13, %p1166_p11 }
  0x79   : > { %vm549_vm6 = vcmp.lt.s32.totalorder %v1513_v36, 392  ;;  %vm547_vm7 = vcmp.lt.s32.totalorder %v1516_v37, 392  ;;  %v1544_v52 = vadd.s32 %v1492_v19, %v519_v38  ;;  %v518_v53 = vadd.s32 104, %v505_v17 }
  0x7a   : > { %vm544_vm8 = vcmp.lt.s32.totalorder %v1524_v40, 392  ;;  %v1550_v58 = vadd.s32 %v1492_v19, %v517_v41  ;;  %v1553_v59 = vadd.s32 %v1492_v19, %v520_v42  ;;  %vm542_vm9 = vcmp.lt.s32.totalorder %v1529_v43, 392  ;;  %p1169_p7 = pnand %p1168_p3, %p1162_p8 }
  0x7b   : > { %vm545_vm10 = vcmp.lt.s32.totalorder %v1532_v44, 392  ;;  %vm543_vm11 = vcmp.lt.s32.totalorder %v1535_v45, 392  ;;  %v1611_v21 = vadd.s32 %v1492_v19, %v518_v53  ;;  %vm552_vm12 = vcmp.lt.s32.totalorder %v1544_v52, 392 }
  0x7c   : > { %vm550_vm13 = vcmp.lt.s32.totalorder %v1550_v58, 392  ;;  %vm553_vm14 = vcmp.lt.s32.totalorder %v1553_v59, 392 }
  0x7d   : > { %vm551_vm15 = vcmp.lt.s32.totalorder %v1611_v21, 392 }
  0x7f   : > { %936 = vmatpush3.bf16.xpose.msra.mxu0 %v1057_v2  ;;  %973 = vmatpush3.bf16.xpose.msra.mxu1 %v1057_v2 }
  0x80   : > { %937 = vmatprep.subr.bf16.mxu0 %v1058_v5  ;;  %966 = vmatprep.subr.bf16.mxu1 %v1058_v5 }
  0x87   : > { %938 = vmatpush3.bf16.xpose.msra.mxu0 %v1058_v5  ;;  %974 = vmatpush3.bf16.xpose.msra.mxu1 %v1058_v5 }
  0x88   : > { %939 = vmatprep.subr.bf16.mxu0 %v1059_v6  ;;  %967 = vmatprep.subr.bf16.mxu1 %v1059_v6 }
  0x8f   : > { %940 = vmatpush3.bf16.xpose.msra.mxu0 %v1059_v6  ;;  %975 = vmatpush3.bf16.xpose.msra.mxu1 %v1059_v6 }
  0x90   : > { %941 = vmatprep.subr.bf16.mxu0 %v1060_v7  ;;  %968 = vmatprep.subr.bf16.mxu1 %v1060_v7 }
  0x97   : > { %942 = vmatpush3.bf16.xpose.msra.mxu0 %v1060_v7  ;;  %976 = vmatpush3.bf16.xpose.msra.mxu1 %v1060_v7 }
  0x98   : > { %943 = vmatprep.subr.bf16.mxu0 %v1061_v8  ;;  %969 = vmatprep.subr.bf16.mxu1 %v1061_v8 }
  0x9f   : > { %944 = vmatpush3.bf16.xpose.msra.mxu0 %v1061_v8  ;;  %977 = vmatpush3.bf16.xpose.msra.mxu1 %v1061_v8 }
  0xa0   : > { %945 = vmatprep.subr.bf16.mxu0 %v1062_v9  ;;  %970 = vmatprep.subr.bf16.mxu1 %v1062_v9 }
  0xa7   : > { %946 = vmatpush3.bf16.xpose.msra.mxu0 %v1062_v9  ;;  %978 = vmatpush3.bf16.xpose.msra.mxu1 %v1062_v9 }
  0xae   : > { %948 = vmatmul.mubr.bf16.vlgmr.msra.gmra.mrb[0].mxu0 %v1064_v10  ;;  %956 = vmatmul.mubr.bf16.vlgmr.msra.gmra.mrb[0].mxu1 %v1068_v11 }
  0xaf   : > { %951 = vmatprep.mubr.bf16.mxu0 %v1065_v12  ;;  %959 = vmatprep.mubr.bf16.mxu1 %v1069_v13 }
  0xb6   : > { %952 = vmatmul.mubr.bf16.gmra.mrb[4].mxu0 %v1066_v14  ;;  %960 = vmatmul.mubr.bf16.gmra.mrb[4].mxu1 %v1070_v15 }
 0x181   : > { %v949_v46 = vpop.f32.mrb[0].mxu0  ;;  %v957_v47 = vpop.f32.mrb[0].mxu1 }
 0x182   : > { %v433_v48 = vadd.f32 %v949_v46, %v1520_v39  ;;  %v424_v49 = vpop.f32.mrb[1].mxu0  ;;  %v465_v50 = vadd.f32 %v957_v47, %v1520_v39  ;;  %v456_v51 = vpop.f32.mrb[1].mxu1 }
 0x183   : > { %v425_v54 = vadd.f32 %v1520_v39, %v424_v49  ;;  %v950_v55 = vpop.f32.mrb[2].mxu0  ;;  %v457_v56 = vadd.f32 %v1520_v39, %v456_v51  ;;  %v958_v57 = vpop.f32.mrb[2].mxu1 }
 0x184   : > { %v489_v60 = vmax.f32 %v433_v48, 0.0  ;;  %v436_v61 = vadd.f32 %v950_v55, %v1520_v39  ;;  %v427_v62 = vpop.f32.mrb[3].mxu0  ;;  %v497_v63 = vmax.f32 %v465_v50, 0.0  ;;  %v468_v0 = vadd.f32 %v958_v57, %v1520_v39  ;;  %v459_v1 = vpop.f32.mrb[3].mxu1 }
 0x185   : > { %v487_v2 = vmax.f32 %v425_v54, 0.0  ;;  %v428_v3 = vadd.f32 %v1520_v39, %v427_v62  ;;  %v495_v4 = vmax.f32 %v457_v56, 0.0  ;;  %v460_v5 = vadd.f32 %v1520_v39, %v459_v1 }
 0x186   : > { %v1561_v6 = vsel %vm540_vm0, %v489_v60, 0.0  ;;  %v490_v7 = vmax.f32 %v436_v61, 0.0  ;;  %v1565_v8 = vsel %vm548_vm4, %v497_v63, 0.0  ;;  %v498_v9 = vmax.f32 %v468_v0, 0.0 }
 0x187   : > { %608 = vst [vmem:[%s1569_s11 + $0x10] sm:$0xff] %v1561_v6  ;;  %v1575_v10 = vsel %vm538_vm1, %v487_v2, 0.0  ;;  %v488_v11 = vmax.f32 %v428_v3, 0.0  ;;  %616 = vst [vmem:[%s1569_s11 + $0x50] sm:$0xff] %v1565_v8  ;;  %v1581_v12 = vsel %vm546_vm5, %v495_v4, 0.0  ;;  %v496_v13 = vmax.f32 %v460_v5, 0.0 }
 0x188   : > { %606 = vst [vmem:[%s1569_s11] sm:$0xff] %v1575_v10  ;;  %v1587_v14 = vsel %vm541_vm2, %v490_v7, 0.0  ;;  %614 = vst [vmem:[%s1569_s11 + $0x40] sm:$0xff] %v1581_v12  ;;  %v1595_v15 = vsel %vm549_vm6, %v498_v9, 0.0 }
 0x189   : > { %609 = vst [vmem:[%s1569_s11 + $0x18] sm:$0xff] %v1587_v14  ;;  %v1601_v16 = vsel %vm539_vm3, %v488_v11, 0.0  ;;  %v953_v17 = vpop.f32.mrb[4].mxu0  ;;  %617 = vst [vmem:[%s1569_s11 + $0x58] sm:$0xff] %v1595_v15  ;;  %v1608_v18 = vsel %vm547_vm7, %v496_v13, 0.0  ;;  %v961_v20 = vpop.f32.mrb[4].mxu1 }
 0x18a   : > { %607 = vst [vmem:[%s1569_s11 + $0x8] sm:$0xff] %v1601_v16  ;;  %v622_v22 = vadd.f32 %v1601_v16, %v1575_v10  ;;  %v449_v23 = vadd.f32 %v953_v17, %v1520_v39  ;;  %v440_v24 = vpop.f32.mrb[5].mxu0  ;;  %615 = vst [vmem:[%s1569_s11 + $0x48] sm:$0xff] %v1608_v18  ;;  %v481_v25 = vadd.f32 %v961_v20, %v1520_v39  ;;  %v472_v29 = vpop.f32.mrb[5].mxu1 }
 0x18b   : > { %v441_v31 = vadd.f32 %v1520_v39, %v440_v24  ;;  %v954_v32 = vpop.f32.mrb[6].mxu0  ;;  %v473_v19 = vadd.f32 %v1520_v39, %v472_v29  ;;  %v962_v33 = vpop.f32.mrb[6].mxu1 }
 0x18c   : > { %v623_v38 = vadd.f32 %v622_v22, %v1561_v6  ;;  %v493_v41 = vmax.f32 %v449_v23, 0.0  ;;  %v452_v42 = vadd.f32 %v954_v32, %v1520_v39  ;;  %v443_v46 = vpop.f32.mrb[7].mxu0  ;;  %v501_v47 = vmax.f32 %v481_v25, 0.0  ;;  %v475_v48 = vpop.f32.mrb[7].mxu1 }
 0x18d   : > { %v491_v49 = vmax.f32 %v441_v31, 0.0  ;;  %v444_v50 = vadd.f32 %v1520_v39, %v443_v46  ;;  %v499_v51 = vmax.f32 %v473_v19, 0.0  ;;  %v484_v53 = vadd.f32 %v962_v33, %v1520_v39 }
 0x18e   : > { %v1632_v54 = vsel %vm544_vm8, %v493_v41, 0.0  ;;  %v624_v55 = vadd.f32 %v623_v38, %v1587_v14  ;;  %v494_v56 = vmax.f32 %v452_v42, 0.0  ;;  %v1637_v57 = vsel %vm552_vm12, %v501_v47, 0.0 }
 0x18f   : > { %612 = vst [vmem:[%s1569_s11 + $0x30] sm:$0xff] %v1632_v54  ;;  %v1643_v60 = vsel %vm542_vm9, %v491_v49, 0.0  ;;  %v492_v61 = vmax.f32 %v444_v50, 0.0  ;;  %620 = vst [vmem:[%s1569_s11 + $0x70] sm:$0xff] %v1637_v57  ;;  %v1649_v62 = vsel %vm550_vm13, %v499_v51, 0.0  ;;  %v502_v63 = vmax.f32 %v484_v53, 0.0 }
 0x190   : > { %610 = vst [vmem:[%s1569_s11 + $0x20] sm:$0xff] %v1643_v60  ;;  %v625_v0 = vadd.f32 %v624_v55, %v1643_v60  ;;  %v1658_v1 = vsel %vm545_vm10, %v494_v56, 0.0  ;;  %618 = vst [vmem:[%s1569_s11 + $0x60] sm:$0xff] %v1649_v62  ;;  %v476_v2 = vadd.f32 %v1520_v39, %v475_v48 }
 0x191   : > { %613 = vst [vmem:[%s1569_s11 + $0x38] sm:$0xff] %v1658_v1  ;;  %v1667_v3 = vsel %vm543_vm11, %v492_v61, 0.0  ;;  %v1671_v4 = vsel %vm553_vm14, %v502_v63, 0.0 }
 0x192   : > { %611 = vst [vmem:[%s1569_s11 + $0x28] sm:$0xff] %v1667_v3  ;;  %v626_v5 = vadd.f32 %v625_v0, %v1667_v3  ;;  %621 = vst [vmem:[%s1569_s11 + $0x78] sm:$0xff] %v1671_v4  ;;  %v500_v39 = vmax.f32 %v476_v2, 0.0 }
 0x194   : > { %v627_v7 = vadd.f32 %v626_v5, %v1632_v54  ;;  %v1689_v9 = vsel %vm551_vm15, %v500_v39, 0.0 }
 0x195   : > { %619 = vst [vmem:[%s1569_s11 + $0x68] sm:$0xff] %v1689_v9 }
 0x196   : > { %v628_v11 = vadd.f32 %v627_v7, %v1658_v1 }
 0x197   : > { %1172 = shalt.err (!%p1169_p7)
}
 0x198   : > { %s1173_s24 = scalar_lea.hbm %s1682_s7, 2048  ;;  %s1177_s23 = scalar_lea.hbm %s1835_s3, 8192 }
 0x199   : > { %p1174_p9 = scmp.ne.s32.totalorder %s1682_s7, %s1173_s24  ;;  %p1178_p5 = scmp.lt.u32.totalorder %s1682_s7, %s1835_s3 }
 0x19a   : > { %p1179_p10 = scmp.lt.u32.totalorder %s1177_s23, %s1173_s24  ;;  %p1181_p2 = scmp.lt.u32.totalorder %s1173_s24, %s1682_s7 }
 0x19b   : > { %p1175_p12 = pnand %p1174_p9, %p1412_p6 }
 0x19c   : > { %p1180_p1 = por %p1179_p10, %p1178_p5 }
 0x19d   : > { %p1176_p0 = pneg %p1175_p12 }
 0x19e   : > { %p1182_p4 = por %p1181_p2, %p1180_p1 }
 0x1a0   : > { %p1183_p8 = pnand %p1182_p4, %p1176_p0 }
 0x1a2   : > { %1186 = shalt.err (!%p1183_p8)
}
 0x1a3   : > { %s1269_s6 = smov 128   ;;  %s1270_s25 = smov 8   ;;  %v629_v13 = vadd.f32 %v628_v11, %v1581_v12 }
 0x1a4   : > { %989 = dma.vmem_to_hbm [thread:$0]  (%p1412_p6), %s1684_s30, 2048, %s1682_s7, %s719_s20, %s1269_s6, %s1269_s6, %s1270_s25  }
 0x1a5   : > { %p603_p11 = scmp.lt.s32.totalorder %s1693_s27, 128  ;;  %v630_v17 = vadd.f32 %v629_v13, %v1608_v18  ;;  %s887_s30 = sshll.u32 %s1467_s8, 1 }
 0x1a6   : > { %s910_s7 = sshll.u32 %s1318_s19, 5  ;;  %s724_s24 = scalar_lea.sflag [#allocation10], %s1467_s8 }
 0x1a7   : > { %s1857_s27 = smov (!%p603_p11, %s1693_s27), 128  ;;  %v631_v20 = vadd.f32 %v630_v17, %v1565_v8  ;;  %s1788_s10 = scalar_lea.hbm %s1836_s4, %s910_s7 }
 0x1a8   : > { %s605_s29 = scvt.s32.f32 %s1857_s27  ;;  %s253_s27 = scalar_lea.vmem [#allocation9], %s887_s30 }
 0x1a9   : > { %v632_v22 = vadd.f32 %v631_v20, %v1595_v15  ;;  %s753_s20 = sshll.u32 %s253_s27, 4  ;;  %s1271_s19 = smov [#allocation9]   ;;  %s1790_s20 = int_to_ptr.vmem [resolvable:$true] %s753_s20 }
 0x1aa   : > { %v643_v25 = vstv %s605_s29  ;;  %s1187_s28 = scalar_lea.vmem %s1790_s20, 32  ;;  %s1191_s21 = sshll.u32 %s1271_s19, 4  ;;  %s1192_s21 = int_to_ptr.vmem [resolvable:$false] %s1191_s21 }
 0x1ab   : > { %v633_v23 = vadd.f32 %v632_v22, %v1649_v62  ;;  %1071 = vrcp.f32 %v643_v25  ;;  %p1188_p13 = scmp.ne.s32.totalorder %s1790_s20, %s1187_s28  ;;  %s1193_s23 = scalar_lea.vmem %s1192_s21, 64 }
 0x1ac   : > { %p1194_p9 = scmp.lt.s32.totalorder %s1790_s20, %s1192_s21  ;;  %p1195_p12 = scmp.lt.s32.totalorder %s1193_s23, %s1187_s28 }
 0x1ad   : > { %v634_v24 = vadd.f32 %v633_v23, %v1689_v9  ;;  %p1189_p3 = pnand %p1188_p13, %p1412_p6 }
 0x1ae   : > { %p1196_p0 = por %p1195_p12, %p1194_p9 }
 0x1af   : > { %v635_v29 = vadd.f32 %v634_v24, %v1637_v57  ;;  %p1190_p7 = pneg %p1189_p3 }
 0x1b1   : > { %v636_v31 = vadd.f32 %v635_v29, %v1671_v4  ;;  %p1197_p5 = pnand %p1196_p0, %p1190_p7 }
 0x1b3   : > { %v637_v32 = vrot.slane %v636_v31, 4 }
 0x1b5   : > { %v638_v19 = vadd.f32 %v637_v32, %v636_v31  ;;  %v1072_v42 = vpop.eup %1071 }
 0x1b7   : > { %v639_v33 = vrot.slane %v638_v19, 2 }
 0x1b9   : > { %v640_v38 = vadd.f32 %v639_v33, %v638_v19 }
 0x1bb   : > { %v641_v41 = vrot.slane %v640_v38, 1 }
 0x1bd   : > { %v1732_v46 = vadd.f32 %v641_v41, %v640_v38 }
 0x1bf   : > { %v645_v47 = vmul.f32 %v1072_v42, %v1732_v46 }
 0x1c1   : > { %v646_v48 = vsub.f32 %v1575_v10, %v645_v47  ;;  %v647_v49 = vsub.f32 %v1601_v16, %v645_v47  ;;  %v648_v50 = vsub.f32 %v1561_v6, %v645_v47  ;;  %v649_v51 = vsub.f32 %v1587_v14, %v645_v47 }
 0x1c2   : > { %v650_v53 = vsub.f32 %v1643_v60, %v645_v47  ;;  %v651_v55 = vsub.f32 %v1667_v3, %v645_v47  ;;  %v652_v56 = vsub.f32 %v1632_v54, %v645_v47  ;;  %v653_v61 = vsub.f32 %v1658_v1, %v645_v47 }
 0x1c3   : > { %v654_v63 = vsub.f32 %v1581_v12, %v645_v47  ;;  %v655_v0 = vsub.f32 %v1608_v18, %v645_v47  ;;  %v656_v10 = vsub.f32 %v1565_v8, %v645_v47  ;;  %v657_v16 = vsub.f32 %v1595_v15, %v645_v47 }
 0x1c4   : > { %v658_v6 = vsub.f32 %v1649_v62, %v645_v47  ;;  %v659_v14 = vsub.f32 %v1689_v9, %v645_v47  ;;  %v660_v60 = vsub.f32 %v1637_v57, %v645_v47  ;;  %v661_v2 = vsub.f32 %v1671_v4, %v645_v47 }
 0x1c5   : > { %v662_v54 = vsel %vm538_vm1, %v646_v48, 0.0  ;;  %v663_v12 = vsel %vm539_vm3, %v647_v49, 0.0  ;;  %v670_v18 = vsel %vm546_vm5, %v654_v63, 0.0  ;;  %v671_v8 = vsel %vm547_vm7, %v655_v0, 0.0 }
 0x1c6   : > { %v672_v15 = vsel %vm548_vm4, %v656_v10, 0.0  ;;  %v673_v57 = vsel %vm549_vm6, %v657_v16, 0.0  ;;  %v674_v62 = vsel %vm550_vm13, %v658_v6, 0.0  ;;  %v675_v27 = vsel %vm551_vm15, %v659_v14, 0.0 }
 0x1c7   : > { %v676_v30 = vsel %vm552_vm12, %v660_v60, 0.0  ;;  %v677_v35 = vsel %vm553_vm14, %v661_v2, 0.0  ;;  %v678_v37 = vmul.f32 %v662_v54, %v662_v54  ;;  %v679_v1 = vmul.f32 %v663_v12, %v663_v12 }
 0x1c8   : > { %v664_v34 = vsel %vm540_vm0, %v648_v50, 0.0  ;;  %v665_v36 = vsel %vm541_vm2, %v649_v51, 0.0  ;;  %v666_v21 = vsel %vm542_vm9, %v650_v53, 0.0  ;;  %v667_v52 = vsel %vm543_vm11, %v651_v55, 0.0 }
 0x1c9   : > { %v680_v3 = vmul.f32 %v664_v34, %v664_v34  ;;  %v694_v58 = vadd.f32 %v679_v1, %v678_v37  ;;  %v681_v4 = vmul.f32 %v665_v36, %v665_v36  ;;  %v682_v59 = vmul.f32 %v666_v21, %v666_v21 }
 0x1ca   : > { %v668_v7 = vsel %vm544_vm8, %v652_v56, 0.0  ;;  %v683_v26 = vmul.f32 %v667_v52, %v667_v52  ;;  %v669_v28 = vsel %vm545_vm10, %v653_v61, 0.0  ;;  %v686_v20 = vmul.f32 %v670_v18, %v670_v18 }
 0x1cb   : > { %v695_v5 = vadd.f32 %v694_v58, %v680_v3  ;;  %v684_v11 = vmul.f32 %v668_v7, %v668_v7  ;;  %v685_v17 = vmul.f32 %v669_v28, %v669_v28  ;;  %v687_v23 = vmul.f32 %v671_v8, %v671_v8 }
 0x1cc   : > { %v688_v45 = vmul.f32 %v672_v15, %v672_v15  ;;  %v689_v29 = vmul.f32 %v673_v57, %v673_v57  ;;  %v690_v40 = vmul.f32 %v674_v62, %v674_v62  ;;  %v691_v19 = vmul.f32 %v675_v27, %v675_v27 }
 0x1cd   : > { %v696_v39 = vadd.f32 %v695_v5, %v681_v4  ;;  %v692_v44 = vmul.f32 %v676_v30, %v676_v30  ;;  %v693_v41 = vmul.f32 %v677_v35, %v677_v35  ;;  %vm715_vm0 = vcmask 1040384  }
 0x1cf   : > { %v697_v9 = vadd.f32 %v696_v39, %v682_v59 }
 0x1d1   : > { %v698_v13 = vadd.f32 %v697_v9, %v683_v26 }
 0x1d3   : > { %v699_v43 = vadd.f32 %v698_v13, %v684_v11 }
 0x1d5   : > { %v700_v22 = vadd.f32 %v699_v43, %v685_v17 }
 0x1d7   : > { %v701_v24 = vadd.f32 %v700_v22, %v686_v20 }
 0x1d9   : > { %v702_v25 = vadd.f32 %v701_v24, %v687_v23 }
 0x1db   : > { %v703_v31 = vadd.f32 %v702_v25, %v688_v45 }
 0x1dd   : > { %v704_v32 = vadd.f32 %v703_v31, %v689_v29 }
 0x1df   : > { %v705_v33 = vadd.f32 %v704_v32, %v690_v40 }
 0x1e1   : > { %v706_v38 = vadd.f32 %v705_v33, %v691_v19 }
 0x1e3   : > { %v707_v42 = vadd.f32 %v706_v38, %v692_v44 }
 0x1e5   : > { %v708_v47 = vadd.f32 %v707_v42, %v693_v41 }
 0x1e7   : > { %v709_v48 = vrot.slane %v708_v47, 4 }
 0x1e9   : > { %v710_v49 = vadd.f32 %v709_v48, %v708_v47 }
 0x1eb   : > { %v711_v50 = vrot.slane %v710_v49, 2 }
 0x1ed   : > { %v712_v51 = vadd.f32 %v711_v50, %v710_v49 }
 0x1ef   : > { %v713_v53 = vrot.slane %v712_v51, 1 }
 0x1f1   : > { %v714_v55 = vadd.f32 %v713_v53, %v712_v51 }
 0x1f3   : > { %v716_v56 = vsel %vm715_vm0, %v1732_v46, %v714_v55 }
 0x1f4   : > { %717 = vst [vmem:[%s253_s27] sm:$0x3] %v716_v56 }
 0x1f5   : > { %1200 = shalt.err (!%p1197_p5)
}
 0x1f6   : > { %s1201_s8 = scalar_lea.hbm %s1788_s10, 32  ;;  %s1205_s6 = scalar_lea.hbm %s1836_s4, 128 }
 0x1f7   : > { %p1202_p10 = scmp.ne.s32.totalorder %s1788_s10, %s1201_s8  ;;  %p1206_p4 = scmp.lt.u32.totalorder %s1788_s10, %s1836_s4 }
 0x1f8   : > { %p1207_p8 = scmp.lt.u32.totalorder %s1205_s6, %s1201_s8  ;;  %p1209_p13 = scmp.lt.u32.totalorder %s1201_s8, %s1788_s10 }
 0x1f9   : > { %p1203_p1 = pnand %p1202_p10, %p1412_p6 }
 0x1fa   : > { %p1208_p11 = por %p1207_p8, %p1206_p4 }
 0x1fb   : > { %p1204_p2 = pneg %p1203_p1 }
 0x1fc   : > { %p1210_p3 = por %p1209_p13, %p1208_p11 }
 0x1fe   : > { %p1211_p7 = pnand %p1210_p3, %p1204_p2 }
 0x200   : > { %1214 = shalt.err (!%p1211_p7)
}
 0x201   : > { %990 = dma.vmem_to_hbm [thread:$0]  (%p1412_p6), %s1790_s20, 32, %s1788_s10, %s724_s24  }
 0x202 PF: > { %p1016_p9 = scmp.ge.s32.totalorder %s1261_s18, 2  ;;  %s765_s30 = sand.u32 1, %s1249_s15  }
 0x203   : > { %p1851_p12 = scmp.ne.s32.totalorder %s1841_s22, 0  ;;  %s766_s7 = scalar_lea.sflag [#allocation4], %s765_s30 }
 0x205   : > { %p1005_p0 = pnand %p1016_p9, %p1851_p12 }
 0x207   : > { %1240 = dma.done.wait (!%p1005_p0), %s766_s7, 2048  }
 0x208   : > { %1242 = vsyncadd (!%p1005_p0), %s766_s7, 4294965248  ;;  %s775_s27 = scalar_lea.sflag [#allocation10], %s765_s30 }
 0x209   : > { %1244 = dma.done.wait (!%p1005_p0), %s775_s27, 32  }
 0x20a   : > { %1246 = vsyncadd (!%p1005_p0), %s775_s27, 4294967264  ;;  %p22_p6 = scmp.ge.s32.totalorder %s1402_s9, 6   ;;  %s1852_s15 = smov %s1253_s16 }
 0x20b   : > { %s1853_s16 = smov %s1257_s17  ;;  %s1854_s17 = smov %s1418_s14 }
 0x20c   : > { %s1855_s18 = smov %s1402_s9  ;;  %24 = sbr.rel (!%p22_p6) target bundleno = 8 (0x8), region = 102 }
 0x213   :  { %780 = vsyncpa [#allocation3], 1 }
 0x214   :  { %782 = vsyncpa [#allocation3 + $0x1], 1 }
 0x215   :  { %783 = vsyncpa [#allocation6], 1 }
 0x216   :  { %784 = vsyncpa [#allocation4], 1 }
 0x217   :  { %786 = vsyncpa [#allocation4 + $0x1], 1 }
 0x218   :  { %787 = vsyncpa [#allocation10], 1 }
 0x219   :  { %789 = vsyncpa [#allocation10 + $0x1], 1 }

</bundles_post_ra>
